<compile_context>
chip_gen: v6e
topology: v6e:2x2x1
jax: 0.10.0
libtpu: 0.0.40
codegen_flags: <defaults>
</compile_context>

<pallas_src>
import functools

import jax
import jax.numpy as jnp
from jax.experimental import pallas as pl
from jax.experimental.pallas import tpu as pltpu

_LANE = 128
_MIN_ROW_LANES = 512  # keep DMA rows >= 2 KiB (f32) for HBM burst efficiency


def _tpu_params():
    """Per-generation tuning: (target input-buffer bytes, split spatial for 2 TCs, VMEM cap)."""
    target = 4 * 1024 * 1024          # v5e / v6e sweet spot
    split_spatial = False
    vmem_cap = 128 * 1024 * 1024
    try:
        info = pltpu.get_tpu_info()
        vmem_cap = int(getattr(info, "vmem_capacity_bytes", vmem_cap))
    except Exception:
        pass
    if vmem_cap <= 64 * 1024 * 1024:  # v7x: 64 MiB VMEM, 3.2 TB/s HBM, 2 TCs
        target = 6 * 1024 * 1024
        split_spatial = True
    return target, split_spatial, vmem_cap


def _choose_tiles(n, c, hw, itemsize, target_bytes, split_spatial):
    """Pick (spatial_tile, channel_tile, sublane_group)."""
    sub = max(8, 32 // itemsize)                 # sublane packing: 8 f32, 16 bf16, 32 i8
    hw_ceil = pl.cdiv(hw, _LANE) * _LANE

    # Spatial tile: as wide as a full-C slab allows, floored at ~2 KiB rows.
    t = (target_bytes // max(c * itemsize, 1)) // _LANE * _LANE
    t = max(t, _MIN_ROW_LANES)
    t = min(t, hw_ceil)
    t = max(t, _LANE)
    if split_spatial and n == 1 and hw_ceil > _LANE:
        # v7x: make sure both TensorCores get at least one spatial tile.
        half = pl.cdiv(pl.cdiv(hw_ceil, 2), _LANE) * _LANE
        t = min(t, max(_LANE, half))

    # Channel tile: full C unless a (C, t) slab blows the budget; otherwise a
    # multiple of the sublane packing so in-kernel sublane-group accumulation
    # stays layout-aligned (ragged channel tail is masked in-kernel).
    ct = c
    if c * t * itemsize > target_bytes:
        ct = (target_bytes // (t * itemsize)) // sub * sub
        ct = max(sub, ct)
        if ct >= c:
            ct = c
    return t, ct, sub


def _mask_kernel(x_ref, o_ref, acc_ref, *, esp, c_rem, multi_step, group):
    # x_ref:   (1, ct, t) input tile
    # o_ref:   (1, 1, t)  output tile (resident across the channel grid axis)
    # acc_ref: (group, t) float32 sublane-aligned partial-sum scratch
    t = x_ref.shape[2]

    if not multi_step:
        # Single channel step: reduce straight to the output, no accumulator.
        s = jnp.sum(jnp.abs(x_ref[0]), axis=0, keepdims=True, dtype=jnp.float32)
        o_ref[0] = (s > esp).astype(o_ref.dtype)
        return

    cc = pl.program_id(2)
    ct = x_ref.shape[1]
    last = pl.num_programs(2) - 1

    @pl.when(cc == 0)
    def _():
        acc_ref[...] = jnp.zeros_like(acc_ref)

    def accumulate(absx):
        # (ct, t) -> (ct//group, group, t) is a pure vreg regrouping; the sum
        # over axis 0 is VPU-only adds into the sublane-aligned f32 partial.
        acc_ref[...] += jnp.sum(absx.reshape(ct // group, group, t), axis=0,
                                dtype=jnp.float32)

    if c_rem:
        # Ragged channel tail: mask garbage rows of the (unpadded) last block.
        @pl.when(cc != last)
        def _():
            accumulate(jnp.abs(x_ref[0]))

        @pl.when(cc == last)
        def _():
            absx = jnp.abs(x_ref[0])
            ch = jax.lax.broadcasted_iota(jnp.int32, absx.shape, 0)
            accumulate(jnp.where(ch < c_rem, absx, jnp.zeros_like(absx)))
    else:
        accumulate(jnp.abs(x_ref[0]))

    @pl.when(cc == last)
    def _():
        # One cross-sublane (XLU) collapse per spatial tile.
        total = jnp.sum(acc_ref[...], axis=0, keepdims=True)
        o_ref[0] = (total > esp).astype(o_ref.dtype)


def masklayer(x, esp=1e-6):
    """(|x|.sum(dim=1) > esp).astype(float32) for NCHW input x."""
    n, c, h, w = x.shape
    hw = h * w
    itemsize = jnp.dtype(x.dtype).itemsize

    target, split_spatial, vmem_cap = _tpu_params()
    t, ct, sub = _choose_tiles(n, c, hw, itemsize, target, split_spatial)

    n_s = pl.cdiv(hw, t)
    n_c = pl.cdiv(c, ct)
    multi_step = n_c > 1
    c_rem = (c % ct) if multi_step else 0

    # Free metadata reshape (NCHW is contiguous); no padding anywhere.
    x3 = x.reshape(n, c, hw)

    # Explicit VMEM budget: double-buffered input/output + accumulator, with
    # sublane padding accounted for, clamped to the chip's capacity.
    ct_pad = pl.cdiv(ct, sub) * sub
    vmem_needed = (2 * ct_pad * t * itemsize   # input double buffer
                   + 2 * 8 * t * 4             # output double buffer (f32, 8-sublane pad)
                   + sub * t * 4)              # accumulator scratch
    vmem_limit = min(vmem_cap, max(vmem_needed * 3 // 2, 16 * 1024 * 1024))

    kernel = functools.partial(_mask_kernel, esp=esp, c_rem=c_rem,
                               multi_step=multi_step, group=sub)
    out = pl.pallas_call(
        kernel,
        out_shape=jax.ShapeDtypeStruct((n, 1, hw), jnp.float32),
        grid=(n, n_s, n_c),
        in_specs=[pl.BlockSpec((1, ct, t), lambda b, s, cc: (b, cc, s))],
        out_specs=pl.BlockSpec((1, 1, t), lambda b, s, cc: (b, 0, s)),
        scratch_shapes=[pltpu.VMEM((sub, t), jnp.float32)],
        compiler_params=pltpu.CompilerParams(
            dimension_semantics=("parallel", "parallel", "arbitrary"),
            vmem_limit_bytes=vmem_limit,
        ),
    )(x3)

    # Free metadata reshape back to (N, H, W).
    return out.reshape(n, h, w)


def masklayer_ref(x, esp=1e-6):
    return (jnp.sum(jnp.abs(x.astype(jnp.float32)), axis=1) > esp).astype(jnp.float32)


if __name__ == "__main__":
    key = jax.random.PRNGKey(0)
    # Small NCHW input: batch=2, channels=4, spatial=16x16
    x = jax.random.normal(key, (2, 4, 16, 16), dtype=jnp.float32)
    # Zero out a few spatial positions so the mask has both 0s and 1s
    x = x.at[:, :, 0, 0].set(0.0)
    x = x.at[:, :, 3, 5].set(0.0)

    out = masklayer(x)
    jax.block_until_ready(out)

    ref = masklayer_ref(x)
    assert out.shape == (2, 16, 16)
    assert out.dtype == jnp.float32
    assert jnp.array_equal(out, ref), "Pallas output mismatch vs reference"

    print("KERNEL_OK")
</pallas_src>

<mosaic_0001>
module attributes {stable_mosaic.version = 11 : i64} {
  func.func @_mask_kernel(%arg0: i32, %arg1: i32, %arg2: i32, %arg3: memref<1x4x256xf32, #tpu.memory_space<vmem>>, %arg4: memref<1x1x256xf32, #tpu.memory_space<vmem>>, %arg5: memref<8x256xf32, #tpu.memory_space<vmem>>) attributes {dimension_semantics = [#tpu.dimension_semantics<parallel>, #tpu.dimension_semantics<parallel>, #tpu.dimension_semantics<arbitrary>], iteration_bounds = array<i64: 2, 1, 1>, scalar_prefetch = 0 : i64, scratch_operands = 1 : i64, tpu.core_type = #tpu.core_type<tc>, window_params = [{transform_indices = @transform_0, window_bounds = array<i64: 1, 4, 256>}, {transform_indices = @transform_1, window_bounds = array<i64: 1, 1, 256>}]} {
    %c0 = arith.constant 0 : index
    %c0_0 = arith.constant 0 : index
    %c0_1 = arith.constant 0 : index
    %0 = vector.load %arg3[%c0, %c0_0, %c0_1] : memref<1x4x256xf32, #tpu.memory_space<vmem>>, vector<1x4x256xf32>
    %1 = vector.shape_cast %0 : vector<1x4x256xf32> to vector<4x256xf32>
    %2 = math.absf %1 : vector<4x256xf32>
    %cst = arith.constant dense<0.000000e+00> : vector<256xf32>
    %3 = vector.multi_reduction <add>, %2, %cst [0] : vector<4x256xf32> to vector<256xf32>
    %4 = vector.shape_cast %3 : vector<256xf32> to vector<1x256xf32>
    %cst_2 = arith.constant 9.99999997E-7 : f32
    %5 = vector.broadcast %cst_2 : f32 to vector<1x256xf32>
    %6 = arith.cmpf ogt, %4, %5 : vector<1x256xf32>
    %7 = arith.extui %6 : vector<1x256xi1> to vector<1x256xi32>
    %8 = arith.sitofp %7 : vector<1x256xi32> to vector<1x256xf32>
    %c0_3 = arith.constant 0 : index
    %c0_4 = arith.constant 0 : index
    %c0_5 = arith.constant 0 : index
    %9 = vector.load %arg4[%c0_3, %c0_4, %c0_5] : memref<1x1x256xf32, #tpu.memory_space<vmem>>, vector<1x1x256xf32>
    %10 = vector.shape_cast %9 : vector<1x1x256xf32> to vector<1x256xf32>
    %11 = vector.shape_cast %8 : vector<1x256xf32> to vector<1x1x256xf32>
    tpu.vector_store %arg4[%c0_3, %c0_4, %c0_5], %11 {strides = array<i32>} : memref<1x1x256xf32, #tpu.memory_space<vmem>>, vector<1x1x256xf32>,
    return
  }
  func.func @transform_0(%arg0: i32, %arg1: i32, %arg2: i32) -> (i32, i32, i32) {
    %c0_i32 = arith.constant 0 : i32
    return %arg0, %arg2, %arg1 : i32, i32, i32
  }
  func.func @transform_1(%arg0: i32, %arg1: i32, %arg2: i32) -> (i32, i32, i32) {
    %c0_i32 = arith.constant 0 : i32
    %c0_i32_0 = arith.constant 0 : i32
    return %arg0, %c0_i32, %arg1 : i32, i32, i32
  }
}

</mosaic_0001>

<bundles_post_ra>
// kernel: tpu_custom_call.1
= control target key start
LH: loop header
LB: loop body
LE: loop exit
PB: predicated region body
PF: predicated region fallthrough
CT: control target
= control target key end

     0   :  { %6 = vsyncpa [#allocation4], 0  ;;  %s658_s0 = inlined_call_operand.hbm [shape: f32[2,4,256], index: 0, kind: input, shape index: {}]   ;;  %s659_s1 = inlined_call_operand.hbm [shape: f32[2,1,256], index: 1, kind: output, shape index: {}]  }
   0x1   :  { %8 = vsyncpa [#allocation4 + $0x1], 0 }
   0x2   :  { %9 = vsyncpa [#allocation5], 0 }
   0x3   :  { %11 = vsyncpa [#allocation5 + $0x1], 0  ;;  %s523_s6 = smov 0   ;;  %s525_s7 = smov 0  }
   0x4   :  { %s527_s8 = smov 0   ;;  %s529_s9 = smov 0  }
   0x5   :  { %s531_s10 = smov 0   ;;  %s533_s11 = smov 0  }
   0x6 LB: > { %s316_s12 = sadd.s32 4294967295, %s507_s11   ;;  %s317_s13 = sadd.s32 4294967294, %s507_s11   ;;  %s507_s11 = sphi %s533_s11, %s17_s11   ;;  %s503_s10 = sphi %s531_s10, %s671_s10   ;;  %s499_s9 = sphi %s529_s9, %s670_s9   ;;  %s495_s8 = sphi %s527_s8, %s669_s8   ;;  %s491_s7 = sphi %s525_s7, %s668_s7   ;;  %s487_s6 = sphi %s523_s6, %s667_s6  }
   0x7   : > { %s36_s14 = sadd.s32 1, %s503_s10  ;;  %s47_s15 = sadd.s32 1, %s495_s8 }
   0x8   : > { %p38_p0 = scmp.ge.s32.totalorder %s36_s14, 2  ;;  %p54_p1 = scmp.ne.s32.totalorder %s495_s8, %s491_s7 }
   0x9   : > { %p55_p2 = scmp.eq.s32.totalorder %s507_s11, 0  ;;  %p60_p3 = scmp.ne.s32.totalorder %s491_s7, %s487_s6 }
   0xa   : > { %s673_s14 = smov (%p38_p0, %s36_s14), 0  ;;  %p61_p5 = scmp.eq.s32.totalorder %s316_s12, 0 }
   0xb   : > { %p564_p4 = por %p55_p2, %p54_p1  ;;  %s40_s17 = ssub.s32 %s503_s10, %s673_s14 }
   0xc   : > { %p86_p6 = scmp.eq.s32.totalorder %s316_s12, 1  ;;  %p45_p7 = scmp.eq.s32.totalorder %s40_s17, 0 }
   0xd   : > { %p570_p8 = por %p61_p5, %p60_p3  ;;  %p92_p10 = scmp.eq.s32.totalorder %s317_s13, 1 }
   0xe   : > { %p574_p9 = por %p86_p6, %p54_p1  ;;  %p347_p13 = scmp.lt.s32.totalorder %s507_s11, 2 }
   0xf   : > { %s579_s20 = scalar_select %p45_p7, %s495_s8, %s47_s15  }
  0x10   : > { %p581_p11 = por %p92_p10, %p60_p3  ;;  %s112_s22 = sand.u32 1, %s495_s8  }
  0x11   : > { %s320_s23 = sshll.u32 %s112_s22, 3  ;;  %s333_s24 = sshll.u32 %s503_s10, 7 }
  0x12   : > { %s663_s21 = scalar_select %p581_p11, 1, 0 }
  0x13   : > { %s126_s27 = scalar_lea.hbm %s658_s0, %s333_s24  ;;  %s116_s28 = scalar_lea.vmem [#allocation3], %s320_s23 }
  0x14   : > { %s128_s29 = sshll.u32 %s116_s28, 4  ;;  %p594_p0 = pnand %p347_p13, %p564_p4  ;;  %s129_s29 = int_to_ptr.vmem [resolvable:$true] %s128_s29 }
  0x15   : > { %p323_p1 = scmp.ge.s32.totalorder %s507_s11, 1  ;;  %p133_p2 = scmp.lt.s32.totalorder %s507_s11, 3 }
  0x16   : > { %s113_s2 = scalar_lea.sflag [#allocation4], %s112_s22  ;;  %p401_p3 = pneg %p594_p0 }
  0x17   : > { %s412_s3 = scalar_lea.vmem %s129_s29, 128  ;;  %s509_s4 = smov [#allocation3]  }
  0x18   : > { %p413_p5 = scmp.ne.s32.totalorder %s129_s29, %s412_s3  ;;  %s417_s5 = sshll.u32 %s509_s4, 4  ;;  %s418_s5 = int_to_ptr.vmem [resolvable:$false] %s417_s5 }
  0x19   : > { %s419_s12 = scalar_lea.vmem %s418_s5, 256  ;;  %p420_p10 = scmp.lt.s32.totalorder %s129_s29, %s418_s5 }
  0x1a   : > { %p415_p6 = pnand %p413_p5, %p401_p3  ;;  %p421_p12 = scmp.lt.s32.totalorder %s419_s12, %s412_s3 }
  0x1c   : > { %p416_p7 = pneg %p415_p6  ;;  %p422_p4 = por %p421_p12, %p420_p10 }
  0x1e   : > { %p423_p13 = pnand %p422_p4, %p416_p7 }
  0x20   : > { %426 = shalt.err (!%p423_p13)
}
  0x21   : > { %342 = dma.hbm_to_vmem [thread:$0]  (!%p594_p0), %s126_s27, 128, %s129_s29, %s113_s2  }
  0x22   : > { %p134_p11 = pnand %p323_p1, %p133_p2 }
  0x23   : > { %s609_s13 = sand.u32 (!%p134_p11), 1, %s491_s7  }
  0x24   : > { %137 = sbr.rel (%p134_p11) target bundleno = 81 (0x51), region = 24  ;;  %s324_s15 = sshll.u32 (!%p134_p11), %s609_s13, 3 }
  0x25   : > { %s140_s16 = scalar_lea.sflag (!%p134_p11), [#allocation4], %s609_s13  ;;  %s143_s17 = scalar_lea.vmem (!%p134_p11), [#allocation3], %s324_s15 }
  0x29   : > { %478 = dma.done.wait (%p570_p8), %s140_s16, 128  }
  0x2a   : > { %480 = vsyncadd (%p570_p8), %s140_s16, 4294967168  ;;  %v164_v0 = vld [vmem:[%s143_s17] sm:$0xff]  ;;  %vm169_vm0 = vcmask 1043456   ;;  %v510_v12 = vmov 1966171168   ;;  %v196_v14 = vlaneseq  ;;  %s325_s18 = sshll.u32 %s609_s13, 1 }
  0x2b   : > { %v165_v1 = vand.u32 2147483647, %v164_v0  ;;  %v194_v13 = vunpack.c.l.s4 %v510_v12  ;;  %v511_v22 = vmov 0.0   ;;  %s161_s22 = scalar_lea.vmem [#allocation6], %s325_s18  ;;  %s334_s24 = sshll.u32 %s499_s9, 5 }
  0x2c   : > { %v197_v20 = vshrl.u32 %v196_v14, 7  ;;  %s230_s23 = sshll.u32 %s161_s22, 4  ;;  %vm210_vm3 = vcmp.lt.s32.totalorder %v196_v14, 256  ;;  %s228_s27 = scalar_lea.hbm %s659_s1, %s334_s24  ;;  %s231_s23 = int_to_ptr.vmem [resolvable:$true] %s230_s23 }
  0x2d   : > { %v167_v2 = vcombine.high %v165_v1, %v165_v1  ;;  %v170_v3 = vsel %vm169_vm0, %v165_v1, 0.0  ;;  %v195_v19 = vunpack.c.0.s8 %v194_v13  ;;  %s214_s28 = scalar_lea.sflag [#allocation5], %s609_s13  ;;  %s427_s29 = scalar_lea.vmem %s231_s23, 32 }
  0x2e   : > { %v171_v4 = vrot.slane %v170_v3, 4  ;;  %p428_p8 = scmp.ne.s32.totalorder %s231_s23, %s427_s29  ;;  %s512_s30 = smov [#allocation6]  }
  0x2f   : > { %v177_v5 = vsel %vm169_vm0, %v167_v2, 0.0  ;;  %v198_v24 = vsub.s32 %v195_v19, %v197_v20  ;;  %s431_s2 = sshll.u32 %s512_s30, 4  ;;  %s432_s2 = int_to_ptr.vmem [resolvable:$false] %s431_s2 }
  0x30   : > { %v172_v6 = vadd.f32 %v171_v4, %v170_v3  ;;  %v178_v7 = vrot.slane %v177_v5, 4  ;;  %p429_p11 = pnand %p428_p8, %p574_p9  ;;  %s433_s3 = scalar_lea.vmem %s432_s2, 64 }
  0x31   : > { %p434_p0 = scmp.lt.s32.totalorder %s231_s23, %s432_s2  ;;  %p435_p1 = scmp.lt.s32.totalorder %s433_s3, %s427_s29 }
  0x32   : > { %v173_v8 = vrot.slane %v172_v6, 2  ;;  %v179_v9 = vadd.f32 %v178_v7, %v177_v5  ;;  %p430_p12 = pneg %p429_p11 }
  0x33   : > { %p436_p2 = por %p435_p1, %p434_p0 }
  0x34   : > { %v174_v10 = vadd.f32 %v173_v8, %v172_v6  ;;  %v180_v11 = vrot.slane %v179_v9, 2 }
  0x35   : > { %p437_p3 = pnand %p436_p2, %p430_p12 }
  0x36   : > { %v175_v15 = vrot.slane %v174_v10, 1  ;;  %v181_v16 = vadd.f32 %v180_v11, %v179_v9 }
  0x38   : > { %v176_v17 = vadd.f32 %v175_v15, %v174_v10  ;;  %v182_v18 = vrot.slane %v181_v16, 1 }
  0x3a   : > { %v183_v21 = vadd.f32 %v182_v18, %v181_v16  ;;  %vm184_vm1 = vcmp.gt.f32.partialorder %v176_v17, 1e-06 }
  0x3b   : > { %v326_v23 = vsel %vm184_vm1, 1.0, %v511_v22 }
  0x3c   : > { %vm185_vm2 = vcmp.gt.f32.partialorder %v183_v21, 1e-06 }
  0x3d   : > { %v327_v25 = vsel %vm185_vm2, 1.0, %v511_v22 }
  0x3e   : > { %v192_v26 = vcombine.low %v326_v23, %v327_v25 }
  0x40   : > { %v199_v27 = vrot.slane %v192_v26, %v198_v24 }
  0x42   : > { %v206_v28 = vrot.slane %v199_v27, %v198_v24 }
  0x44   : > { %212 = vst.msk [vmem:[%s161_s22] sm:$0x3] %vm210_vm3, %v206_v28 }
  0x45   : > { %440 = shalt.err (!%p437_p3)
}
  0x46   : > { %s441_s9 = scalar_lea.hbm %s228_s27, 32  ;;  %s445_s12 = scalar_lea.hbm %s659_s1, 64 }
  0x47   : > { %p442_p5 = scmp.ne.s32.totalorder %s228_s27, %s441_s9  ;;  %p446_p10 = scmp.lt.s32.totalorder %s228_s27, %s659_s1 }
  0x48   : > { %p447_p4 = scmp.lt.s32.totalorder %s445_s12, %s441_s9 }
  0x49   : > { %p443_p6 = pnand %p442_p5, %p574_p9 }
  0x4a   : > { %p448_p13 = por %p447_p4, %p446_p10 }
  0x4b   : > { %p444_p7 = pneg %p443_p6 }
  0x4d   : > { %p449_p8 = pnand %p448_p13, %p444_p7 }
  0x4f   : > { %452 = shalt.err (!%p449_p8)
}
  0x50   : > { %337 = dma.vmem_to_hbm [thread:$0]  (%p574_p9), %s231_s23, 32, %s228_s27, %s214_s28  }
  0x51 PF: > { %s242_s16 = sand.u32 1, %s487_s6   ;;  %p665_p11 = scmp.ne.s32.totalorder %s663_s21, 0 }
  0x52   : > { %p666_p12 = scmp.ge.s32.totalorder %s507_s11, 2  ;;  %s243_s17 = scalar_lea.sflag [#allocation5], %s242_s16 }
  0x54   : > { %p344_p0 = pnand %p666_p12, %p665_p11 }
  0x56   : > { %p345_p1 = pneg %p344_p0 }
  0x58   : > { %482 = dma.done.wait (%p345_p1), %s243_s17, 32  }
  0x59   : > { %484 = vsyncadd (%p345_p1), %s243_s17, 4294967264  ;;  %s17_s11 = sadd.s32 1, %s507_s11   ;;  %s667_s6 = smov %s491_s7 }
  0x5a   : > { %p14_p2 = scmp.ge.s32.totalorder %s17_s11, 4   ;;  %s668_s7 = smov %s495_s8 }
  0x5b   : > { %s669_s8 = smov %s579_s20  ;;  %s670_s9 = smov %s503_s10 }
  0x5c   : > { %s671_s10 = smov %s673_s14  ;;  %16 = sbr.rel (!%p14_p2) target bundleno = 6 (0x6), region = 69 }
  0x61   :  { %248 = vsyncpa [#allocation4], 1 }
  0x62   :  { %250 = vsyncpa [#allocation4 + $0x1], 1 }
  0x63   :  { %251 = vsyncpa [#allocation5], 1 }
  0x64   :  { %253 = vsyncpa [#allocation5 + $0x1], 1 }

</bundles_post_ra>
